<compile_context>
chip_gen: v5e
topology: v5e:2x2
jax: 0.10.0
libtpu: 0.0.40
codegen_flags: <defaults>
</compile_context>

<pallas_src>
import functools

import jax
import jax.numpy as jnp
from jax import lax
from jax.experimental import pallas as pl
from jax.experimental.pallas import tpu as pltpu

LANES = 128
SUBLANES = 8
INNER_ROWS = 512                      # 512 x 128 f32 chunk = 256 KiB of temps
TARGET_BLOCK_BYTES = 4 * 1024 * 1024  # ~4 MiB of HBM per input per grid step
VMEM_LIMIT_BYTES = 40 * 1024 * 1024   # buffers (~16 MiB) + chunk temps + slack


def _pixel_counting_kernel(x_ref, y_ref, o_xy_ref, o_y_ref, *,
                           total_rows, apply_mask, inner_rows):
    """Accumulates partial sums of x*y and y into resident (8, 128) f32 blocks."""
    c = pl.program_id(0)          # core-split index (CORE_PARALLEL on v7x)
    i = pl.program_id(1)          # sequential block index within this split

    @pl.when(i == 0)
    def _init():
        o_xy_ref[...] = jnp.zeros_like(o_xy_ref)
        o_y_ref[...] = jnp.zeros_like(o_y_ref)

    block_rows = x_ref.shape[0]
    # Logical row offset of this block (only used for ragged-row masking).
    block_start = (c * pl.num_programs(1) + i) * block_rows

    def accumulate(xv, yv, chunk_rows):
        g = chunk_rows // SUBLANES
        # Vreg-wise VPU adds into the resident (8, 128) accumulators.
        o_xy_ref[...] += (xv * yv).reshape(g, SUBLANES, LANES).sum(axis=0)
        o_y_ref[...] += yv.reshape(g, SUBLANES, LANES).sum(axis=0)

    def process_chunk(r0, chunk_rows):
        xv = x_ref[pl.ds(r0, chunk_rows), :].astype(jnp.float32)
        yv = y_ref[pl.ds(r0, chunk_rows), :].astype(jnp.float32)
        if not apply_mask:
            accumulate(xv, yv, chunk_rows)
            return

        chunk_start = block_start + r0
        needs_mask = chunk_start + chunk_rows > total_rows

        @pl.when(needs_mask)
        def _masked():
            # Natural vreg layout: iota over the full (chunk_rows, LANES) tile.
            row_ids = lax.broadcasted_iota(jnp.int32, (chunk_rows, LANES), 0)
            valid = row_ids < (total_rows - chunk_start)
            accumulate(jnp.where(valid, xv, 0.0),
                       jnp.where(valid, yv, 0.0),
                       chunk_rows)

        @pl.when(jnp.logical_not(needs_mask))
        def _unmasked():
            accumulate(xv, yv, chunk_rows)

    n_inner = block_rows // inner_rows
    rem_rows = block_rows - n_inner * inner_rows

    if n_inner == 1:
        process_chunk(0, inner_rows)
    elif n_inner > 1:
        def loop_body(k, carry):
            r0 = pl.multiple_of(k * inner_rows, inner_rows)
            process_chunk(r0, inner_rows)
            return carry
        lax.fori_loop(0, n_inner, loop_body, 0)
    if rem_rows > 0:
        process_chunk(n_inner * inner_rows, rem_rows)


@functools.lru_cache(maxsize=None)
def _num_tensorcores():
    """2 only on 2-TC chips (v7x); v5e/v6e are single-TensorCore."""
    try:
        kind = jax.devices()[0].device_kind.lower()
    except Exception:
        return 1
    return 2 if "v7" in kind or "7x" in kind else 1


def _partial_sums(x2, y2):
    """Run the kernel on (rows, 128) views; return two (splits*8, 128) partial sums."""
    rows = x2.shape[0]
    itemsize = max(x2.dtype.itemsize, y2.dtype.itemsize)

    # Dtype-aware block: ~4 MiB of HBM bytes per input per grid step.
    block_rows = max(
        INNER_ROWS,
        (TARGET_BLOCK_BYTES // (LANES * itemsize)) // INNER_ROWS * INNER_ROWS)
    if rows <= block_rows:
        block_rows = rows                       # rows is a multiple of 8
    inner_rows = min(INNER_ROWS, block_rows)

    n_blocks = pl.cdiv(rows, block_rows)
    splits = 2 if (_num_tensorcores() == 2 and n_blocks >= 2) else 1
    steps = pl.cdiv(n_blocks, splits)
    apply_mask = (splits * steps * block_rows) != rows

    def in_map(c, i):
        # Clamp: duplicate / ragged blocks are fully masked inside the kernel.
        return (jnp.minimum(c * steps + i, n_blocks - 1), 0)

    kernel = functools.partial(
        _pixel_counting_kernel,
        total_rows=rows, apply_mask=apply_mask, inner_rows=inner_rows)

    cost = pl.CostEstimate(
        flops=3 * rows * LANES,
        transcendentals=0,
        bytes_accessed=rows * LANES * (x2.dtype.itemsize + y2.dtype.itemsize))

    def run(dim_sems):
        return pl.pallas_call(
            kernel,
            out_shape=(
                jax.ShapeDtypeStruct((splits * SUBLANES, LANES), jnp.float32),
                jax.ShapeDtypeStruct((splits * SUBLANES, LANES), jnp.float32),
            ),
            grid_spec=pltpu.PrefetchScalarGridSpec(
                num_scalar_prefetch=0,
                grid=(splits, steps),
                in_specs=[
                    pl.BlockSpec((block_rows, LANES), in_map),
                    pl.BlockSpec((block_rows, LANES), in_map),
                ],
                out_specs=[
                    pl.BlockSpec((SUBLANES, LANES), lambda c, i: (c, 0)),
                    pl.BlockSpec((SUBLANES, LANES), lambda c, i: (c, 0)),
                ],
            ),
            compiler_params=pltpu.CompilerParams(
                dimension_semantics=dim_sems,
                vmem_limit_bytes=VMEM_LIMIT_BYTES),
            cost_estimate=cost,
        )(x2, y2)

    if splits == 2:
        try:
            # Engage both v7x TensorCores explicitly.
            return run((pltpu.CORE_PARALLEL, pltpu.ARBITRARY))
        except Exception:
            # Conservative fallback if core-parallel lowering is unavailable.
            return run(("arbitrary", "arbitrary"))
    return run(("arbitrary", "arbitrary"))


def pixel_counting_regress(x, y):
    """JAX/Pallas equivalent of PixelCountingRegress.forward: 1 - sum(x*y)/sum(y)."""
    assert x.shape == y.shape, "x and y must have the same shape"

    # Keep the native dtype (the kernel upcasts to f32); bool is not DMA-friendly.
    if x.dtype == jnp.bool_:
        x = x.astype(jnp.int8)
    if y.dtype == jnp.bool_:
        y = y.astype(jnp.int8)

    n = x.size
    main_rows = (n // (LANES * SUBLANES)) * SUBLANES   # multiple of 8
    main_n = main_rows * LANES

    shared = jnp.float32(0.0)
    gt = jnp.float32(0.0)

    if main_n == n and main_rows > 0:
        x_main = x.reshape(main_rows, LANES)
        y_main = y.reshape(main_rows, LANES)
        x_tail = y_tail = None
    else:
        xf = x.reshape(-1)
        yf = y.reshape(-1)
        if main_rows > 0:
            x_main = xf[:main_n].reshape(main_rows, LANES)
            y_main = yf[:main_n].reshape(main_rows, LANES)
        else:
            x_main = y_main = None
        x_tail, y_tail = xf[main_n:], yf[main_n:]

    if x_main is not None:
        out_xy, out_y = _partial_sums(x_main, y_main)
        shared = shared + jnp.sum(out_xy)
        gt = gt + jnp.sum(out_y)

    if x_tail is not None and x_tail.size > 0:
        # <1024-element tail reduced in plain JAX (avoids a full-array pad copy).
        xt = x_tail.astype(jnp.float32)
        yt = y_tail.astype(jnp.float32)
        shared = shared + jnp.sum(xt * yt)
        gt = gt + jnp.sum(yt)

    # Matches the reference formula exactly (including inf/nan when sum(y)==0).
    return jnp.float32(1.0) - shared / gt


if __name__ == "__main__":
    key = jax.random.PRNGKey(0)
    kx, ky, kx2, ky2 = jax.random.split(key, 4)

    # Segmentation-style pixel counting: predictions x, binary ground truth y.
    x = jax.random.uniform(kx, (2, 4, 16, 16), dtype=jnp.float32)
    y = (jax.random.uniform(ky, (2, 4, 16, 16)) > 0.5).astype(jnp.float32)

    loss = pixel_counting_regress(x, y)
    jax.block_until_ready(loss)
    ref = jnp.float32(1.0) - jnp.sum(x * y) / jnp.sum(y)
    assert jnp.allclose(loss, ref, rtol=1e-5, atol=1e-5), (loss, ref)

    # Misaligned element count (exercises the no-pad tail epilogue path).
    x2 = jax.random.uniform(kx2, (3, 5, 37, 23), dtype=jnp.float32)
    y2 = (jax.random.uniform(ky2, (3, 5, 37, 23)) > 0.5).astype(jnp.float32)
    loss2 = pixel_counting_regress(x2, y2)
    jax.block_until_ready(loss2)
    ref2 = jnp.float32(1.0) - jnp.sum(x2 * y2) / jnp.sum(y2)
    assert jnp.allclose(loss2, ref2, rtol=1e-5, atol=1e-5), (loss2, ref2)

    print("KERNEL_OK")
</pallas_src>

<mosaic_0001>
module attributes {stable_mosaic.version = 11 : i64} {
  func.func @_pixel_counting_kernel(%arg0: i32, %arg1: i32, %arg2: memref<16x128xf32, #tpu.memory_space<vmem>>, %arg3: memref<16x128xf32, #tpu.memory_space<vmem>>, %arg4: memref<8x128xf32, #tpu.memory_space<vmem>>, %arg5: memref<8x128xf32, #tpu.memory_space<vmem>>) attributes {dimension_semantics = [#tpu.dimension_semantics<arbitrary>, #tpu.dimension_semantics<arbitrary>], iteration_bounds = array<i64: 1, 1>, scalar_prefetch = 0 : i64, scratch_operands = 0 : i64, tpu.core_type = #tpu.core_type<tc>, window_params = [{transform_indices = @transform_0, window_bounds = array<i64: 16, 128>}, {transform_indices = @transform_1, window_bounds = array<i64: 16, 128>}, {transform_indices = @transform_2, window_bounds = array<i64: 8, 128>}, {transform_indices = @transform_3, window_bounds = array<i64: 8, 128>}]} {
    %c0_i32 = arith.constant 0 : i32
    %0 = arith.cmpi eq, %arg1, %c0_i32 : i32
    %1 = arith.extui %0 : i1 to i32
    %c0_i32_0 = arith.constant 0 : i32
    %2 = arith.cmpi ne, %1, %c0_i32_0 : i32
    scf.if %2 {
      %cst_13 = arith.constant 0.000000e+00 : f32
      %16 = vector.broadcast %cst_13 : f32 to vector<8x128xf32>
      %c0_14 = arith.constant 0 : index
      %c0_15 = arith.constant 0 : index
      %17 = vector.load %arg4[%c0_14, %c0_15] : memref<8x128xf32, #tpu.memory_space<vmem>>, vector<8x128xf32>
      tpu.vector_store %arg4[%c0_14, %c0_15], %16 {strides = array<i32>} : memref<8x128xf32, #tpu.memory_space<vmem>>, vector<8x128xf32>,
      %cst_16 = arith.constant 0.000000e+00 : f32
      %18 = vector.broadcast %cst_16 : f32 to vector<8x128xf32>
      %c0_17 = arith.constant 0 : index
      %c0_18 = arith.constant 0 : index
      %19 = vector.load %arg5[%c0_17, %c0_18] : memref<8x128xf32, #tpu.memory_space<vmem>>, vector<8x128xf32>
      tpu.vector_store %arg5[%c0_17, %c0_18], %18 {strides = array<i32>} : memref<8x128xf32, #tpu.memory_space<vmem>>, vector<8x128xf32>,
    } else {
    }
    %c0 = arith.constant 0 : index
    %c0_1 = arith.constant 0 : index
    %3 = vector.load %arg2[%c0, %c0_1] : memref<16x128xf32, #tpu.memory_space<vmem>>, vector<16x128xf32>
    %c0_2 = arith.constant 0 : index
    %c0_3 = arith.constant 0 : index
    %4 = vector.load %arg3[%c0_2, %c0_3] : memref<16x128xf32, #tpu.memory_space<vmem>>, vector<16x128xf32>
    %c0_4 = arith.constant 0 : index
    %c0_5 = arith.constant 0 : index
    %5 = vector.load %arg4[%c0_4, %c0_5] : memref<8x128xf32, #tpu.memory_space<vmem>>, vector<8x128xf32>
    %6 = arith.mulf %3, %4 : vector<16x128xf32>
    %7 = vector.shape_cast %6 : vector<16x128xf32> to vector<2x8x128xf32>
    %cst = arith.constant dense<0.000000e+00> : vector<8x128xf32>
    %8 = vector.multi_reduction <add>, %7, %cst [0] : vector<2x8x128xf32> to vector<8x128xf32>
    %9 = arith.addf %5, %8 : vector<8x128xf32>
    %c0_6 = arith.constant 0 : index
    %c0_7 = arith.constant 0 : index
    %10 = vector.load %arg4[%c0_6, %c0_7] : memref<8x128xf32, #tpu.memory_space<vmem>>, vector<8x128xf32>
    tpu.vector_store %arg4[%c0_6, %c0_7], %9 {strides = array<i32>} : memref<8x128xf32, #tpu.memory_space<vmem>>, vector<8x128xf32>,
    %c0_8 = arith.constant 0 : index
    %c0_9 = arith.constant 0 : index
    %11 = vector.load %arg5[%c0_8, %c0_9] : memref<8x128xf32, #tpu.memory_space<vmem>>, vector<8x128xf32>
    %12 = vector.shape_cast %4 : vector<16x128xf32> to vector<2x8x128xf32>
    %cst_10 = arith.constant dense<0.000000e+00> : vector<8x128xf32>
    %13 = vector.multi_reduction <add>, %12, %cst_10 [0] : vector<2x8x128xf32> to vector<8x128xf32>
    %14 = arith.addf %11, %13 : vector<8x128xf32>
    %c0_11 = arith.constant 0 : index
    %c0_12 = arith.constant 0 : index
    %15 = vector.load %arg5[%c0_11, %c0_12] : memref<8x128xf32, #tpu.memory_space<vmem>>, vector<8x128xf32>
    tpu.vector_store %arg5[%c0_11, %c0_12], %14 {strides = array<i32>} : memref<8x128xf32, #tpu.memory_space<vmem>>, vector<8x128xf32>,
    return
  }
  func.func @transform_0(%arg0: i32, %arg1: i32) -> (i32, i32) {
    %c1_i32 = arith.constant 1 : i32
    %0 = arith.muli %arg0, %c1_i32 : i32
    %1 = arith.addi %0, %arg1 : i32
    %c0_i32 = arith.constant 0 : i32
    %2 = arith.minsi %1, %c0_i32 : i32
    %c0_i32_0 = arith.constant 0 : i32
    %c0_i32_1 = arith.constant 0 : i32
    return %2, %c0_i32_0 : i32, i32
  }
  func.func @transform_1(%arg0: i32, %arg1: i32) -> (i32, i32) {
    %c1_i32 = arith.constant 1 : i32
    %0 = arith.muli %arg0, %c1_i32 : i32
    %1 = arith.addi %0, %arg1 : i32
    %c0_i32 = arith.constant 0 : i32
    %2 = arith.minsi %1, %c0_i32 : i32
    %c0_i32_0 = arith.constant 0 : i32
    %c0_i32_1 = arith.constant 0 : i32
    return %2, %c0_i32_0 : i32, i32
  }
  func.func @transform_2(%arg0: i32, %arg1: i32) -> (i32, i32) {
    %c0_i32 = arith.constant 0 : i32
    %c0_i32_0 = arith.constant 0 : i32
    return %arg0, %c0_i32 : i32, i32
  }
  func.func @transform_3(%arg0: i32, %arg1: i32) -> (i32, i32) {
    %c0_i32 = arith.constant 0 : i32
    %c0_i32_0 = arith.constant 0 : i32
    return %arg0, %c0_i32 : i32, i32
  }
}

</mosaic_0001>

<bundles_post_ra>
// kernel: tpu_custom_call.1
= control target key start
LH: loop header
LB: loop body
LE: loop exit
PB: predicated region body
PF: predicated region fallthrough
CT: control target
= control target key end

     0   :  { %9 = vsyncpa [#allocation3], 0  ;;  %s274_s0 = inlined_call_operand.hbm [shape: f32[16,128], index: 0, kind: input, shape index: {}]   ;;  %s275_s1 = inlined_call_operand.hbm [shape: f32[16,128], index: 1, kind: input, shape index: {}]   ;;  %s276_s2 = inlined_call_operand.hbm [shape: f32[8,128], index: 2, kind: output, shape index: {0}]   ;;  %s277_s3 = inlined_call_operand.hbm [shape: f32[8,128], index: 3, kind: output, shape index: {1}]  }
   0x1   :  { %10 = vsyncpa [#allocation6], 0 }
   0x2   :  { %11 = vsyncpa [#allocation4], 0 }
   0x3   :  { %12 = vsyncpa [#allocation9], 0  ;;  %s23_s14 = sshll.u32 %s274_s0, 4  ;;  %s236_s15 = smov [#allocation2]   ;;  %s24_s14 = int_to_ptr.hbm [resolvable:$true] %s23_s14 }
   0x4   :  { %s25_s16 = sshll.u32 %s236_s15, 4  ;;  %s42_s19 = sshll.u32 %s275_s1, 4  ;;  %s26_s16 = int_to_ptr.vmem [resolvable:$true] %s25_s16  ;;  %s43_s19 = int_to_ptr.hbm [resolvable:$true] %s42_s19 }
   0x5   :  { %s237_s20 = smov 128   ;;  %s238_s21 = smov 8  }
   0x6   :  { %31 = dma.hbm_to_vmem [thread:$0]  %s24_s14, 256, %s26_s16, [#allocation3], %s237_s20, %s237_s20, %s238_s21  }
   0x7   :  { %s239_s22 = smov [#allocation5]  }
   0x8   :  { %s44_s23 = sshll.u32 %s239_s22, 4  ;;  %s45_s23 = int_to_ptr.vmem [resolvable:$true] %s44_s23 }
   0x9   :  { %50 = dma.hbm_to_vmem [thread:$0]  %s43_s19, 256, %s45_s23, [#allocation6], %s237_s20, %s237_s20, %s238_s21  }
   0xa   :  { %228 = dma.done.wait [#allocation3], 256  }
   0xb   :  { %229 = vsyncadd [#allocation3], 4294967040 }
   0xc   :  { %230 = dma.done.wait [#allocation6], 256  }
   0xd   :  { %231 = vsyncadd [#allocation6], 4294967040  ;;  %v73_v0 = vld [vmem:[#allocation2] sm:$0xff]  ;;  %v74_v1 = vld [vmem:[#allocation2 + $0x8] sm:$0xff]  ;;  %s240_s0 = smov [#allocation8]   ;;  %s105_s26 = sshll.u32 %s277_s3, 4  ;;  %s106_s26 = int_to_ptr.hbm [resolvable:$true] %s105_s26 }
   0xe   :  { %v75_v2 = vld [vmem:[#allocation5] sm:$0xff]  ;;  %v76_v3 = vld [vmem:[#allocation5 + $0x8] sm:$0xff]  ;;  %s103_s24 = sshll.u32 %s240_s0, 4  ;;  %s241_s27 = smov [#allocation7]   ;;  %s104_s24 = int_to_ptr.vmem [resolvable:$true] %s103_s24 }
   0xf   :  { %v78_v4 = vmul.f32 %v75_v2, %v73_v0  ;;  %v79_v5 = vmul.f32 %v76_v3, %v74_v1  ;;  %v84_v6 = vadd.f32 %v76_v3, %v75_v2  ;;  %s92_s28 = sshll.u32 %s241_s27, 4  ;;  %s94_s4 = sshll.u32 %s276_s2, 4  ;;  %s93_s28 = int_to_ptr.vmem [resolvable:$true] %s92_s28  ;;  %s95_s4 = int_to_ptr.hbm [resolvable:$true] %s94_s4 }
  0x11   :  { %v80_v7 = vadd.f32 %v79_v5, %v78_v4  ;;  %86 = vst [vmem:[#allocation8] sm:$0xff] %v84_v6 }
  0x12   :  { %108 = dma.vmem_to_hbm [thread:$0]  %s104_s24, 128, %s106_s26, [#allocation9]  }
  0x13   :  { %82 = vst [vmem:[#allocation7] sm:$0xff] %v80_v7 }
  0x14   :  { %97 = dma.vmem_to_hbm [thread:$0]  %s93_s28, 128, %s95_s4, [#allocation4]  }
  0x15   :  { %232 = dma.done.wait [#allocation4], 128  }
  0x16   :  { %233 = vsyncadd [#allocation4], 4294967168 }
  0x17   :  { %234 = dma.done.wait [#allocation9], 128  }
  0x18   :  { %235 = vsyncadd [#allocation9], 4294967168 }
  0x19   :  { %117 = vsyncpa [#allocation3], 1 }
  0x1a   :  { %118 = vsyncpa [#allocation6], 1 }
  0x1b   :  { %119 = vsyncpa [#allocation4], 1 }
  0x1c   :  { %120 = vsyncpa [#allocation9], 1 }

</bundles_post_ra>
